<compile_context>
chip_gen: v5e
topology: v5e:2x2
jax: 0.10.0
libtpu: 0.0.40
codegen_flags: <defaults>
</compile_context>

<pallas_src>
import jax
import jax.numpy as jnp
from jax.experimental import pallas as pl
from jax.experimental.pallas import tpu as pltpu


# ----------------------------------------------------------------------------
# Backward kernel: grad_in = grad_out * (-coeff), coeff read from SMEM at runtime
# ----------------------------------------------------------------------------
def _neg_scale_kernel(coeff_ref, g_ref, o_ref):
    scale = (-coeff_ref[0]).astype(o_ref.dtype)   # scalar from SMEM, kept in grad dtype
    o_ref[...] = g_ref[...] * scale


# ----------------------------------------------------------------------------
# Layout helpers
# ----------------------------------------------------------------------------
def _fold_lane_dense_2d(x):
    """Reshape to [M, L] with a lane-dense (>=128, multiple-of-128) last dim when possible."""
    n = x.size
    last = x.shape[-1] if x.ndim >= 1 else 1
    if last >= 128 and last % 128 == 0:
        return x.reshape(-1, last)
    for lane in (512, 256, 128):
        if n % lane == 0:
            return x.reshape(-1, lane)
    # Fallback: correctness over lane density (masked partial stores on odd shapes).
    if x.ndim >= 2:
        return x.reshape(-1, last)
    return x.reshape(1, -1)


_TARGET_BLOCK_BYTES = 2 * 1024 * 1024   # ~2 MiB/block -> 4 double-buffered bufs ~= 8 MiB VMEM


def _tile_sizes(m, l, itemsize):
    """Byte-budgeted (tile_m, tile_l); respects sublane/lane multiples or full dims."""
    sub = max(8, 32 // itemsize)          # 8 (f32), 16 (bf16), 32 (int8/fp8)
    row_bytes = l * itemsize
    if row_bytes * sub <= _TARGET_BLOCK_BYTES:
        rows = (_TARGET_BLOCK_BYTES // row_bytes) // sub * sub
        tile_m = m if rows >= m else rows          # multiple of `sub`, or full M
        tile_l = l                                 # full rows (lane axis untiled)
    else:
        tile_m = m if m < sub else sub
        lanes = (_TARGET_BLOCK_BYTES // (tile_m * itemsize)) // 128 * 128
        tile_l = l if lanes >= l else max(lanes, 128)   # multiple of 128, or full L
    return tile_m, tile_l


# ----------------------------------------------------------------------------
# Backward launcher: tiled, pipelined -coeff * grad
# ----------------------------------------------------------------------------
def _reverse_scale(g, coeff):
    if g.size == 0:
        return g
    orig_shape = g.shape
    g2 = _fold_lane_dense_2d(g)
    m, l = g2.shape
    itemsize = jnp.dtype(g2.dtype).itemsize
    tile_m, tile_l = _tile_sizes(m, l, itemsize)
    grid = (pl.cdiv(m, tile_m), pl.cdiv(l, tile_l))

    coeff_smem = jnp.asarray(coeff, jnp.float32).reshape((1,))

    out2 = pl.pallas_call(
        _neg_scale_kernel,
        out_shape=jax.ShapeDtypeStruct((m, l), g2.dtype),
        grid=grid,
        in_specs=[
            pl.BlockSpec(memory_space=pltpu.MemorySpace.SMEM),      # runtime coeff scalar
            pl.BlockSpec((tile_m, tile_l), lambda i, j: (i, j)),
        ],
        out_specs=pl.BlockSpec((tile_m, tile_l), lambda i, j: (i, j)),
        compiler_params=pltpu.CompilerParams(
            dimension_semantics=("parallel", "parallel"),
        ),
    )(coeff_smem, g2)
    return out2.reshape(orig_shape)


# ----------------------------------------------------------------------------
# GradientReverseLayer: forward = identity (no-op), backward = -coeff * grad
# ----------------------------------------------------------------------------
@jax.custom_vjp
def _gradient_reverse(x, coeff):
    del coeff
    return x                      # identity: no kernel, no HBM traffic


def _grl_fwd(x, coeff):
    return x, coeff


def _grl_bwd(coeff, g):
    return _reverse_scale(g, coeff), jnp.zeros_like(coeff)


_gradient_reverse.defvjp(_grl_fwd, _grl_bwd)


def gradient_reverse(x, coeff=1.0):
    coeff = jnp.asarray(coeff, dtype=jnp.float32)   # runtime scalar -> no recompiles
    return _gradient_reverse(x, coeff)


class GradientReverseLayer:
    """Thin stateless wrapper mirroring the nn.Module interface."""

    def __call__(self, x, coeff=1.0):
        return gradient_reverse(x, coeff)


# ----------------------------------------------------------------------------
# Demo / self-check
# ----------------------------------------------------------------------------
if __name__ == "__main__":
    key = jax.random.PRNGKey(0)
    k1, k2, k3 = jax.random.split(key, 3)

    layer = GradientReverseLayer()

    # (1) Conv-like 4D input with last dim < 128 -> refolded lane-dense to (4, 512).
    x = jax.random.normal(k1, (2, 4, 16, 16), jnp.float32)
    coeff = 0.5
    y = layer(x, coeff)
    jax.block_until_ready(y)
    assert jnp.array_equal(y, x), "forward must be identity"

    ct = jax.random.normal(k2, x.shape, jnp.float32)
    _, vjp_fn = jax.vjp(lambda t: gradient_reverse(t, coeff), x)
    (dx,) = vjp_fn(ct)
    jax.block_until_ready(dx)
    assert jnp.allclose(dx, -coeff * ct, atol=1e-6, rtol=1e-6), "reversed gradient mismatch"

    # (2) jit + grad with a traced (runtime) coeff -> one compile shared across coeff values.
    @jax.jit
    def loss_grad(t, w, c):
        return jax.grad(lambda u: jnp.sum(gradient_reverse(u, c) * w))(t)

    w = jax.random.normal(k3, (8, 256), jnp.float32)
    t = jax.random.normal(k1, (8, 256), jnp.float32)
    for c in (0.1, 1.0):
        dxc = loss_grad(t, w, jnp.float32(c))
        jax.block_until_ready(dxc)
        assert jnp.allclose(dxc, -c * w, atol=1e-6, rtol=1e-6)

    # (3) Moderate tensor exercising the multi-block (grid > 1) pipelined backward path.
    x_big = jax.random.normal(k2, (2560, 384), jnp.float32)
    ct_big = jnp.ones_like(x_big)
    _, vjp_big = jax.vjp(lambda u: gradient_reverse(u, 2.0), x_big)
    (dx_big,) = vjp_big(ct_big)
    jax.block_until_ready(dx_big)
    assert jnp.allclose(dx_big, -2.0 * ct_big)

    print("KERNEL_OK")
</pallas_src>

<mosaic_0001>
module attributes {stable_mosaic.version = 11 : i64} {
  func.func @_neg_scale_kernel(%arg0: i32, %arg1: i32, %arg2: memref<1xf32, #tpu.memory_space<smem>>, %arg3: memref<4x512xf32, #tpu.memory_space<vmem>>, %arg4: memref<4x512xf32, #tpu.memory_space<vmem>>) attributes {dimension_semantics = [#tpu.dimension_semantics<parallel>, #tpu.dimension_semantics<parallel>], iteration_bounds = array<i64: 1, 1>, scalar_prefetch = 0 : i64, scratch_operands = 0 : i64, tpu.core_type = #tpu.core_type<tc>, window_params = [{transform_indices = @transform_0, window_bounds = array<i64: 1>}, {transform_indices = @transform_1, window_bounds = array<i64: 4, 512>}, {transform_indices = @transform_2, window_bounds = array<i64: 4, 512>}]} {
    %c0 = arith.constant 0 : index
    %0 = memref.load %arg2[%c0] : memref<1xf32, #tpu.memory_space<smem>>
    %cst = arith.constant 0.000000e+00 : f32
    %1 = arith.subf %cst, %0 : f32
    %c0_0 = arith.constant 0 : index
    %c0_1 = arith.constant 0 : index
    %2 = vector.load %arg3[%c0_0, %c0_1] : memref<4x512xf32, #tpu.memory_space<vmem>>, vector<4x512xf32>
    %3 = vector.broadcast %1 : f32 to vector<4x512xf32>
    %4 = arith.mulf %2, %3 : vector<4x512xf32>
    %c0_2 = arith.constant 0 : index
    %c0_3 = arith.constant 0 : index
    %5 = vector.load %arg4[%c0_2, %c0_3] : memref<4x512xf32, #tpu.memory_space<vmem>>, vector<4x512xf32>
    tpu.vector_store %arg4[%c0_2, %c0_3], %4 {strides = array<i32>} : memref<4x512xf32, #tpu.memory_space<vmem>>, vector<4x512xf32>,
    return
  }
  func.func @transform_0(%arg0: i32, %arg1: i32) -> i32 {
    %c0_i32 = arith.constant 0 : i32
    %c0_i32_0 = arith.constant 0 : i32
    return %c0_i32 : i32
  }
  func.func @transform_1(%arg0: i32, %arg1: i32) -> (i32, i32) {
    %c0_i32 = arith.constant 0 : i32
    return %arg0, %arg1 : i32, i32
  }
  func.func @transform_2(%arg0: i32, %arg1: i32) -> (i32, i32) {
    %c0_i32 = arith.constant 0 : i32
    return %arg0, %arg1 : i32, i32
  }
}

</mosaic_0001>

<bundles_post_ra>
// kernel: tpu_custom_call.1
= control target key start
LH: loop header
LB: loop body
LE: loop exit
PB: predicated region body
PF: predicated region fallthrough
CT: control target
= control target key end

     0   :  { %8 = vsyncpa [#allocation4], 0  ;;  %s133_s0 = inlined_call_operand.<no memory space> [shape: f32[1], index: 0, kind: input, shape index: {}]   ;;  %s134_s1 = inlined_call_operand.hbm [shape: f32[4,512], index: 1, kind: input, shape index: {}]   ;;  %s135_s2 = inlined_call_operand.hbm [shape: f32[4,512], index: 2, kind: output, shape index: {}]  }
   0x1   :  { %9 = vsyncpa [#allocation5], 0  ;;  %s17_s11 = sshll.u32 %s134_s1, 4  ;;  %s107_s12 = smov [#allocation3]   ;;  %s18_s11 = int_to_ptr.hbm [resolvable:$true] %s17_s11 }
   0x2   :  { %s19_s13 = sshll.u32 %s107_s12, 4  ;;  %s20_s13 = int_to_ptr.vmem [resolvable:$true] %s19_s13 }
   0x3   :  { %22 = dma.hbm_to_vmem [thread:$0]  %s18_s11, 256, %s20_s13, [#allocation4]  }
   0x4   :  { %103 = dma.done.wait [#allocation4], 256  }
   0x5   :  { %104 = vsyncadd [#allocation4], 4294967040  ;;  %s28_s16 = ssub.f32 0.0, %s133_s0  ;;  %s108_s17 = smov [#allocation6]   ;;  %v29_v1 = vld [vmem:[#allocation3] sm:$0xff]  ;;  %v30_v2 = vld [vmem:[#allocation3 + $0x8] sm:$0xff] }
   0x6   :  { %s41_s18 = sshll.u32 %s108_s17, 4  ;;  %s43_s21 = sshll.u32 %s135_s2, 4  ;;  %s42_s18 = int_to_ptr.vmem [resolvable:$true] %s41_s18  ;;  %s44_s21 = int_to_ptr.hbm [resolvable:$true] %s43_s21 }
   0x7   :  { %v31_v0 = vstv %s28_s16 }
   0x8   :  { %v32_v3 = vmul.f32 %v31_v0, %v29_v1  ;;  %v33_v4 = vmul.f32 %v31_v0, %v30_v2 }
   0xa   :  { %34 = vst [vmem:[#allocation6] sm:$0xff] %v32_v3 }
   0xb   :  { %35 = vst [vmem:[#allocation6 + $0x8] sm:$0xff] %v33_v4 }
   0xc   :  { %46 = dma.vmem_to_hbm [thread:$0]  %s42_s18, 256, %s44_s21, [#allocation5]  }
   0xd   :  { %105 = dma.done.wait [#allocation5], 256  }
   0xe   :  { %106 = vsyncadd [#allocation5], 4294967040 }
   0xf   :  { %51 = vsyncpa [#allocation4], 1 }
  0x10   :  { %52 = vsyncpa [#allocation5], 1 }

</bundles_post_ra>
